<compile_context>
chip_gen: v7x
topology: tpu7x:2x2x1
jax: 0.10.0
libtpu: 0.0.40
codegen_flags: <defaults>
</compile_context>

<pallas_src>
import jax
import jax.numpy as jnp
from jax.experimental import pallas as pl
from jax.experimental.pallas import tpu as pltpu


def _ranknet_kernel(x1_ref, x2_ref, w_ref, out_ref):
    # d = x1 - x2 on the VPU (packed, 128 lanes dense), one MXU matmul against
    # the block-diagonal folded weight, sigmoid on the EUP over a lane-dense
    # (rows, PACK) result.  The original layer biases cancel exactly in
    # s1 - s2 and never enter the kernel.
    d = x1_ref[...] - x2_ref[...]
    s = jnp.dot(d, w_ref[...], preferred_element_type=jnp.float32)
    out_ref[...] = jax.nn.sigmoid(s)


def _pack_factor(num_features):
    # How many batch rows fit in one 128-lane vreg row.
    if num_features >= 128 or 128 % num_features != 0:
        return 1
    return 128 // num_features


def fold_ranknet_params(params):
    """Fold the 4 linear layers into one block-diagonal (PACK*F, PACK) matrix.

    params = (w1, b1, w2, b2, w3, b3, w4, b4); weights stored (in, out),
    biases (1, out).  The stack is purely affine, so the four weights fold into
    W_eff = W1 @ W2 @ W3 @ W4 (shape (F, 1)) and the biases are dropped: they
    cancel exactly in the score difference s1 - s2.

    The block-diagonal layout matches the row-major reshape (B, F) ->
    (B/PACK, PACK*F): original row 4r+j occupies columns [F*j, F*(j+1)) of
    packed row r, so W_blk[F*j + f, j] = W_eff[f].
    """
    w1, b1, w2, b2, w3, b3, w4, b4 = params
    del b1, b2, b3, b4  # exact cancellation in s1 - s2
    w_eff = (((w1 @ w2) @ w3) @ w4).astype(jnp.float32)  # (F, 1)
    f = w_eff.shape[0]
    pack = _pack_factor(f)
    w_blk = jnp.kron(jnp.eye(pack, dtype=jnp.float32), w_eff)  # (pack*F, pack)
    return w_blk


def ranknet_forward(x1, x2, params=None, *, block_b=8192, w_blk=None):
    """sigmoid(model(x1) - model(x2)) for the 4-layer linear rankNet head.

    Pass `w_blk` (from fold_ranknet_params) to avoid re-folding the parameters
    on every call; otherwise `params` is folded here.
    """
    if w_blk is None:
        w_blk = fold_ranknet_params(params)

    b, f = x1.shape
    pack = w_blk.shape[1]
    assert w_blk.shape[0] == pack * f, "folded weight does not match features"
    lanes = pack * f  # 128 for F=32

    # Tile size in ORIGINAL batch rows; must be a multiple of 8*pack so the
    # packed tile is (tb/pack, lanes) with a sublane count divisible by 8.
    row_mult = 8 * pack
    tb = min(block_b, b)
    tb = max(row_mult, ((tb + row_mult - 1) // row_mult) * row_mult)
    n_blocks = pl.cdiv(b, tb)
    bp = n_blocks * tb
    if bp != b:  # zero-pad: padded rows give score 0 -> 0.5, discarded below
        pad = ((0, bp - b), (0, 0))
        x1 = jnp.pad(x1, pad)
        x2 = jnp.pad(x2, pad)

    rows = bp // pack
    tr = tb // pack
    # Free, contiguous row-major reshapes: pack `pack` batch rows per vreg row.
    x1p = x1.reshape(rows, lanes)
    x2p = x2.reshape(rows, lanes)

    x_spec = pl.BlockSpec((tr, lanes), lambda i: (i, 0))
    w_spec = pl.BlockSpec((lanes, pack), lambda i: (0, 0))  # VMEM-resident

    out = pl.pallas_call(
        _ranknet_kernel,
        out_shape=jax.ShapeDtypeStruct((rows, pack), jnp.float32),
        grid_spec=pltpu.PrefetchScalarGridSpec(
            num_scalar_prefetch=0,
            grid=(n_blocks,),
            in_specs=[x_spec, x_spec, w_spec],
            out_specs=pl.BlockSpec((tr, pack), lambda i: (i, 0)),
        ),
        compiler_params=pltpu.CompilerParams(
            dimension_semantics=("parallel",),
        ),
    )(x1p, x2p, w_blk)

    # Row-major unpack back to one score per original batch row.
    return out.reshape(bp, 1)[:b]


def init_params(key, num_features):
    """Deterministic init mirroring the nn.Linear shapes (stored as (in, out))."""
    sizes = [(num_features, 32), (32, 16), (16, 8), (8, 1)]
    params = []
    for fan_in, fan_out in sizes:
        kw, kb, key = jax.random.split(key, 3)
        bound = 1.0 / jnp.sqrt(float(fan_in))
        w = jax.random.uniform(kw, (fan_in, fan_out), jnp.float32, -bound, bound)
        b = jax.random.uniform(kb, (1, fan_out), jnp.float32, -bound, bound)
        params.extend([w, b])
    return tuple(params)


def ranknet_reference(x1, x2, params):
    """Pure-JAX reference: literal layer-by-layer evaluation (incl. biases)."""
    w1, b1, w2, b2, w3, b3, w4, b4 = params

    def mlp(x):
        h = x @ w1 + b1
        h = h @ w2 + b2
        h = h @ w3 + b3
        h = h @ w4 + b4
        return h

    return jax.nn.sigmoid(mlp(x1) - mlp(x2))


if __name__ == "__main__":
    key = jax.random.PRNGKey(0)
    k1, k2, kp = jax.random.split(key, 3)

    batch = 256
    num_features = 32

    x1 = jax.random.normal(k1, (batch, num_features), jnp.float32)
    x2 = jax.random.normal(k2, (batch, num_features), jnp.float32)
    params = init_params(kp, num_features)

    # Fold the parameters once (hoisted out of the forward call).
    w_blk = fold_ranknet_params(params)

    # Small block_b so the example exercises a multi-block grid (grid=(2,));
    # production default (block_b=8192) gives ~1 MiB input tiles.
    out = ranknet_forward(x1, x2, block_b=128, w_blk=w_blk)
    out = jax.block_until_ready(out)

    ref = ranknet_reference(x1, x2, params)
    assert out.shape == (batch, 1)
    # The affine fold is exact in real arithmetic; the tolerance only covers
    # f32 re-association between folded and layer-by-layer evaluation orders.
    assert jnp.allclose(out, ref, atol=1e-4, rtol=1e-4), float(
        jnp.max(jnp.abs(out - ref))
    )

    print("KERNEL_OK")
</pallas_src>

<mosaic_0001>
module attributes {stable_mosaic.version = 11 : i64} {
  func.func @_ranknet_kernel(%arg0: i32, %arg1: memref<32x128xf32, #tpu.memory_space<vmem>>, %arg2: memref<32x128xf32, #tpu.memory_space<vmem>>, %arg3: memref<128x4xf32, #tpu.memory_space<vmem>>, %arg4: memref<32x4xf32, #tpu.memory_space<vmem>>) attributes {dimension_semantics = [#tpu.dimension_semantics<parallel>], iteration_bounds = array<i64: 2>, scalar_prefetch = 0 : i64, scratch_operands = 0 : i64, tpu.core_type = #tpu.core_type<tc>, window_params = [{transform_indices = @transform_0, window_bounds = array<i64: 32, 128>}, {transform_indices = @transform_1, window_bounds = array<i64: 32, 128>}, {pipeline_mode = #tpu.pipeline_mode<synchronous>, transform_indices = @transform_2, window_bounds = array<i64: 128, 4>}, {transform_indices = @transform_3, window_bounds = array<i64: 32, 4>}]} {
    %c0 = arith.constant 0 : index
    %c0_0 = arith.constant 0 : index
    %0 = vector.load %arg1[%c0, %c0_0] : memref<32x128xf32, #tpu.memory_space<vmem>>, vector<32x128xf32>
    %c0_1 = arith.constant 0 : index
    %c0_2 = arith.constant 0 : index
    %1 = vector.load %arg2[%c0_1, %c0_2] : memref<32x128xf32, #tpu.memory_space<vmem>>, vector<32x128xf32>
    %2 = arith.subf %0, %1 : vector<32x128xf32>
    %c0_3 = arith.constant 0 : index
    %c0_4 = arith.constant 0 : index
    %3 = vector.load %arg3[%c0_3, %c0_4] : memref<128x4xf32, #tpu.memory_space<vmem>>, vector<128x4xf32>
    %cst = arith.constant dense<0.000000e+00> : vector<32x4xf32>
    %4 = tpu.matmul %2, %3, %cst {dimension_numbers = #tpu.dot_dimension_numbers<[1], [0], [0], [1], [0, 0, 1, 1], [], []>} : vector<32x128xf32>, vector<128x4xf32>, vector<32x4xf32> -> vector<32x4xf32>
    %5 = arith.negf %4 : vector<32x4xf32>
    %6 = math.exp %5 : vector<32x4xf32>
    %cst_5 = arith.constant 1.000000e+00 : f32
    %7 = vector.broadcast %cst_5 : f32 to vector<32x4xf32>
    %8 = arith.addf %7, %6 : vector<32x4xf32>
    %9 = arith.divf %7, %8 : vector<32x4xf32>
    %c0_6 = arith.constant 0 : index
    %c0_7 = arith.constant 0 : index
    %10 = vector.load %arg4[%c0_6, %c0_7] : memref<32x4xf32, #tpu.memory_space<vmem>>, vector<32x4xf32>
    tpu.vector_store %arg4[%c0_6, %c0_7], %9 {strides = array<i32>} : memref<32x4xf32, #tpu.memory_space<vmem>>, vector<32x4xf32>,
    return
  }
  func.func @transform_0(%arg0: i32) -> (i32, i32) {
    %c0_i32 = arith.constant 0 : i32
    %c0_i32_0 = arith.constant 0 : i32
    return %arg0, %c0_i32 : i32, i32
  }
  func.func @transform_1(%arg0: i32) -> (i32, i32) {
    %c0_i32 = arith.constant 0 : i32
    %c0_i32_0 = arith.constant 0 : i32
    return %arg0, %c0_i32 : i32, i32
  }
  func.func @transform_2(%arg0: i32) -> (i32, i32) {
    %c0_i32 = arith.constant 0 : i32
    %c0_i32_0 = arith.constant 0 : i32
    %c0_i32_1 = arith.constant 0 : i32
    return %c0_i32, %c0_i32_0 : i32, i32
  }
  func.func @transform_3(%arg0: i32) -> (i32, i32) {
    %c0_i32 = arith.constant 0 : i32
    %c0_i32_0 = arith.constant 0 : i32
    return %arg0, %c0_i32 : i32, i32
  }
}

</mosaic_0001>

<bundles_post_ra>
// kernel: tpu_custom_call.1
= control target key start
LH: loop header
LB: loop body
LE: loop exit
PB: predicated region body
PF: predicated region fallthrough
CT: control target
= control target key end

     0   :  { %s581_s12 = smov 0   ;;  %s666_s0 = inlined_call_operand.vmem [shape: f32[64,128], index: 0, kind: input, shape index: {}]   ;;  %s667_s1 = inlined_call_operand.vmem [shape: f32[64,128], index: 1, kind: input, shape index: {}]   ;;  %s668_s2 = inlined_call_operand.vmem [shape: f32[128,4], index: 2, kind: input, shape index: {}]   ;;  %s669_s3 = inlined_call_operand.vmem [shape: f32[64,4], index: 3, kind: output, shape index: {}]  }
   0x1 LB: > { %s406_s13 = sadd.s32 4294967295, %s559_s12   ;;  %p410_p0 = scmp.ge.s32.totalorder %s559_s12, 1  ;;  %s559_s12 = sphi %s581_s12, %s13_s12  }
   0x2   : > { %p149_p1 = scmp.lt.s32.totalorder %s559_s12, 3 }
   0x4   : > { %p150_p2 = pnand %p410_p0, %p149_p1 }
   0x5   : > { %v208_v0 = vld [vmem:[%s668_s2] sm:$0xff] (!%p150_p2)  ;;  %v209_v1 = vld [vmem:[%s668_s2 + $0x8] sm:$0xff] (!%p150_p2)  ;;  %v210_v2 = vld [vmem:[%s668_s2 + $0x10] sm:$0xff] (!%p150_p2)  ;;  %s411_s20 = sshll.u32 (!%p150_p2), %s406_s13, 2  ;;  %vm333_vm0 = vcmask (!%p150_p2), 31744  }
   0x6   : > { %153 = sbr.rel (%p150_p2) target bundleno = 283 (0x11b), region = 32  ;;  %v481_v3 = vpack.c.bf16 (!%p150_p2), %v209_v1, %v208_v0  ;;  %v211_v4 = vld [vmem:[%s668_s2 + $0x18] sm:$0xff] (!%p150_p2)  ;;  %p179_p3 = scmp.lt.s32.totalorder (!%p150_p2), %s411_s20, 7  ;;  %v212_v6 = vld [vmem:[%s668_s2 + $0x20] sm:$0xff] (!%p150_p2)  ;;  %v213_v7 = vld [vmem:[%s668_s2 + $0x28] sm:$0xff] (!%p150_p2) }
   0x7   : > { %v485_v5 = vpack.c.bf16 (!%p150_p2), %v211_v4, %v210_v2  ;;  %v489_v8 = vpack.c.bf16 (!%p150_p2), %v213_v7, %v212_v6  ;;  %v214_v9 = vld [vmem:[%s668_s2 + $0x30] sm:$0xff] (!%p150_p2)  ;;  %v215_v10 = vld [vmem:[%s668_s2 + $0x38] sm:$0xff] (!%p150_p2)  ;;  %v216_v18 = vld [vmem:[%s668_s2 + $0x40] sm:$0xff] (!%p150_p2) }
   0x8   : > { %482 = vmatprep.subr.bf16.mxu0 (!%p150_p2), %v481_v3  ;;  %513 = vmatprep.subr.bf16.mxu1 (!%p150_p2), %v481_v3  ;;  %v493_v16 = vpack.c.bf16 (!%p150_p2), %v215_v10, %v214_v9  ;;  %v217_v19 = vld [vmem:[%s668_s2 + $0x48] sm:$0xff] (!%p150_p2)  ;;  %v218_v21 = vld [vmem:[%s668_s2 + $0x50] sm:$0xff] (!%p150_p2)  ;;  %v219_v22 = vld [vmem:[%s668_s2 + $0x58] sm:$0xff] (!%p150_p2) }
   0x9   : > { %484 = vmatpush3.bf16.msra.mxu0 (!%p150_p2), %v481_v3  ;;  %521 = vmatpush3.bf16.msra.mxu1 (!%p150_p2), %v481_v3  ;;  %v497_v20 = vpack.c.bf16 (!%p150_p2), %v217_v19, %v216_v18  ;;  %v501_v23 = vpack.c.bf16 (!%p150_p2), %v219_v22, %v218_v21  ;;  %v220_v24 = vld [vmem:[%s668_s2 + $0x60] sm:$0xff] (!%p150_p2)  ;;  %v221_v25 = vld [vmem:[%s668_s2 + $0x68] sm:$0xff] (!%p150_p2)  ;;  %v222_v27 = vld [vmem:[%s668_s2 + $0x70] sm:$0xff] (!%p150_p2) }
   0xa   : > { %486 = vmatprep.subr.bf16.mxu0 (!%p150_p2), %v485_v5  ;;  %514 = vmatprep.subr.bf16.mxu1 (!%p150_p2), %v485_v5  ;;  %v505_v26 = vpack.c.bf16 (!%p150_p2), %v221_v25, %v220_v24  ;;  %v223_v28 = vld [vmem:[%s668_s2 + $0x78] sm:$0xff] (!%p150_p2) }
   0xb   : > { %v509_v29 = vpack.c.bf16 (!%p150_p2), %v223_v28, %v222_v27 }
   0xd   : > { %s671_s20 = smov (!%p179_p3, %s411_s20), 7  ;;  %488 = vmatpush3.bf16.msra.mxu0 %v485_v5  ;;  %522 = vmatpush3.bf16.msra.mxu1 %v485_v5 }
   0xe   : > { %s607_s27 = sshll.u32 %s671_s20, 3  ;;  %490 = vmatprep.subr.bf16.mxu0 %v489_v8  ;;  %515 = vmatprep.subr.bf16.mxu1 %v489_v8 }
   0xf   : > { %s619_s7 = scalar_lea.vmem %s666_s0, %s607_s27  ;;  %s625_s10 = scalar_lea.vmem %s667_s1, %s607_s27 }
  0x10   : > { %v196_v11 = vld [vmem:[%s619_s7] sm:$0xff]  ;;  %v198_v14 = vld [vmem:[%s619_s7 + $0x10] sm:$0xff]  ;;  %v197_v30 = vld [vmem:[%s619_s7 + $0x8] sm:$0xff]  ;;  %s194_s4 = scalar_lea.vmem %s669_s3, %s607_s27 }
  0x11   : > { %v200_v12 = vld [vmem:[%s625_s10] sm:$0xff]  ;;  %v202_v15 = vld [vmem:[%s625_s10 + $0x10] sm:$0xff]  ;;  %492 = vmatpush3.bf16.msra.mxu0 %v489_v8  ;;  %523 = vmatpush3.bf16.msra.mxu1 %v489_v8  ;;  %v201_v31 = vld [vmem:[%s625_s10 + $0x8] sm:$0xff] }
  0x12   : > { %v204_v13 = vsub.f32 %v196_v11, %v200_v12  ;;  %v206_v17 = vsub.f32 %v198_v14, %v202_v15  ;;  %494 = vmatprep.subr.bf16.mxu0 %v493_v16  ;;  %516 = vmatprep.subr.bf16.mxu1 %v493_v16  ;;  %v199_v32 = vld [vmem:[%s619_s7 + $0x18] sm:$0xff]  ;;  %v205_v34 = vsub.f32 %v197_v30, %v201_v31 }
  0x13   : > { %v203_v33 = vld [vmem:[%s625_s10 + $0x18] sm:$0xff] }
  0x14   : > { %475 = vmatprep.mubr.f32.mxu0 %v204_v13  ;;  %478 = vmatprep.mubr.f32.mxu1 %v206_v17  ;;  %v207_v35 = vsub.f32 %v199_v32, %v203_v33 }
  0x15   : > { %496 = vmatpush3.bf16.msra.mxu0 %v493_v16  ;;  %524 = vmatpush3.bf16.msra.mxu1 %v493_v16 }
  0x16   : > { %498 = vmatprep.subr.bf16.mxu0 %v497_v20  ;;  %517 = vmatprep.subr.bf16.mxu1 %v497_v20 }
  0x19   : > { %500 = vmatpush3.bf16.msra.mxu0 %v497_v20  ;;  %525 = vmatpush3.bf16.msra.mxu1 %v497_v20 }
  0x1a   : > { %502 = vmatprep.subr.bf16.mxu0 %v501_v23  ;;  %518 = vmatprep.subr.bf16.mxu1 %v501_v23 }
  0x1d   : > { %504 = vmatpush3.bf16.msra.mxu0 %v501_v23  ;;  %526 = vmatpush3.bf16.msra.mxu1 %v501_v23 }
  0x1e   : > { %506 = vmatprep.subr.bf16.mxu0 %v505_v26  ;;  %519 = vmatprep.subr.bf16.mxu1 %v505_v26 }
  0x21   : > { %508 = vmatpush3.bf16.msra.mxu0 %v505_v26  ;;  %527 = vmatpush3.bf16.msra.mxu1 %v505_v26 }
  0x22   : > { %510 = vmatprep.subr.bf16.mxu0 %v509_v29  ;;  %520 = vmatprep.subr.bf16.mxu1 %v509_v29 }
  0x25   : > { %512 = vmatpush3.bf16.msra.mxu0 %v509_v29  ;;  %528 = vmatpush3.bf16.msra.mxu1 %v509_v29 }
  0x28   : > { %476 = vmatmul.mubr.f32.vlgmr.msra.gmra.mrb[0].mxu0 %v205_v34  ;;  %479 = vmatmul.mubr.f32.vlgmr.msra.gmra.mrb[0].mxu1 %v207_v35 }
  0xfb   : > { %v477_v36 = vpop.f32.mrb[0].mxu0  ;;  %v480_v37 = vpop.f32.mrb[0].mxu1 }
  0xfc   : > { %v418_v38 = vmul.f32 -1.442695, %v477_v36  ;;  %v290_v39 = vpop.f32.mrb[1].mxu0  ;;  %v420_v40 = vmul.f32 -1.442695, %v480_v37  ;;  %v300_v41 = vpop.f32.mrb[1].mxu1 }
  0xfd   : > { %v417_v42 = vmul.f32 -1.442695, %v290_v39  ;;  %v419_v43 = vmul.f32 -1.442695, %v300_v41 }
  0xfe   : > { %537 = vpow2.f32 %v418_v38 }
  0xff   : > { %539 = vpow2.f32 %v417_v42 }
 0x100   : > { %541 = vpow2.f32 %v420_v40 }
 0x101   : > { %543 = vpow2.f32 %v419_v43 }
 0x108   : > { %v538_v44 = vpop.eup %537 }
 0x109   : > { %v540_v45 = vpop.eup %539  ;;  %v322_v46 = vadd.f32 1.0, %v538_v44 }
 0x10a   : > { %v542_v47 = vpop.eup %541  ;;  %v321_v48 = vadd.f32 1.0, %v540_v45 }
 0x10b   : > { %v544_v49 = vpop.eup %543  ;;  %v324_v50 = vadd.f32 1.0, %v542_v47 }
 0x10c   : > { %545 = vrcp.f32 %v321_v48  ;;  %v323_v51 = vadd.f32 1.0, %v544_v49 }
 0x10d   : > { %547 = vrcp.f32 %v322_v46 }
 0x10e   : > { %549 = vrcp.f32 %v323_v51 }
 0x10f   : > { %551 = vrcp.f32 %v324_v50 }
 0x116   : > { %v546_v52 = vpop.eup %545 }
 0x117   : > { %v548_v53 = vpop.eup %547  ;;  %334 = vst.msk [vmem:[%s194_s4] sm:$0xff] %vm333_vm0, %v546_v52 }
 0x118   : > { %v550_v54 = vpop.eup %549  ;;  %335 = vst.msk [vmem:[%s194_s4 + $0x8] sm:$0xff] %vm333_vm0, %v548_v53 }
 0x119   : > { %v552_v55 = vpop.eup %551  ;;  %336 = vst.msk [vmem:[%s194_s4 + $0x10] sm:$0xff] %vm333_vm0, %v550_v54 }
 0x11a   : > { %337 = vst.msk [vmem:[%s194_s4 + $0x18] sm:$0xff] %vm333_vm0, %v552_v55 }
 0x11b PF: > { %s13_s12 = sadd.s32 1, %s559_s12  }
 0x11c   : > { %p10_p4 = scmp.ge.s32.totalorder %s13_s12, 4  }
 0x11e   :  { %12 = sbr.rel (!%p10_p4) target bundleno = 1 (0x1), region = 65 }

</bundles_post_ra>
